<compile_context>
chip_gen: v7x
topology: tpu7x:2x2x1
jax: 0.10.0
libtpu: 0.0.40
codegen_flags: <defaults>
</compile_context>

<pallas_src>
import functools

import jax
import jax.numpy as jnp
import numpy as np
from jax.experimental import pallas as pl
from jax.experimental.pallas import tpu as pltpu


TARGET_TILE_BYTES = 1 << 20            # ~1 MiB of x per grid step
MAX_BATCH_BLOCK = 8                    # static unroll bound for in-kernel batch loop
VMEM_LIMIT_BYTES = 32 * 1024 * 1024    # safe on v5e/v6e/v7x (<= v7x scoped default)


def _round_up(v, m):
    return ((v + m - 1) // m) * m


def _largest_divisor_leq(n, cap):
    cap = max(1, min(n, cap))
    for d in range(cap, 0, -1):
        if n % d == 0:
            return d
    return 1


def mixed_edge_kernel(x_ref, w_ref, b_ref, o_ref):
    """One fused MixedEdge tile (single pass, no accumulator needed).

    x_ref: (NB, C, L)  NB batch rows; channels on sublanes, pixels on lanes
    w_ref: (C, C)      folded weight  I + sum_k W_k  (resident across the grid)
    b_ref: (C, 1)      folded bias    sum_k b_k      (f32, broadcast along lanes)
    o_ref: (NB, C, L)  output tile in the caller's dtype
    """
    w = w_ref[...]
    b = b_ref[...]
    for i in range(x_ref.shape[0]):          # NB is small & static -> unrolled
        acc = jnp.dot(w, x_ref[i], preferred_element_type=jnp.float32)
        o_ref[i] = (acc + b).astype(o_ref.dtype)


def _pick_tiling(N, C, HW, dtype_bytes):
    """Choose (batch_block, lane_tile, padded_HW) -- all static Python ints."""
    # Lane tile: multiple of 128, sized so one batch row's x tile is ~TARGET bytes.
    lane_cap = max(128, (TARGET_TILE_BYTES // (C * dtype_bytes)) // 128 * 128)
    if HW <= lane_cap:
        lane_tile = _round_up(HW, 128)
        hw_pad = lane_tile
    else:
        lane_tile = lane_cap
        hw_pad = _round_up(HW, lane_tile)    # every lane tile full -> unmasked stores

    # If a whole (padded) row fits in one lane tile but is small, block several
    # batch rows per grid step so each step still moves a decent chunk of HBM.
    nb = 1
    row_bytes = C * lane_tile * dtype_bytes
    if hw_pad == lane_tile and row_bytes < TARGET_TILE_BYTES:
        nb = _largest_divisor_leq(
            N, min(MAX_BATCH_BLOCK, TARGET_TILE_BYTES // row_bytes))

    # v7x shards "parallel" grid axes over its 2 TensorCores: make sure even a
    # trivially small problem exposes >= 2 grid steps (an extra step costs only
    # ~0.35us on single-TC v5e/v6e, so this is safe on every generation).
    if (N // nb) * (hw_pad // lane_tile) < 2:
        if N >= 2:
            nb = _largest_divisor_leq(N, N // 2)
        elif hw_pad % 256 == 0:
            lane_tile = hw_pad // 2
    return nb, lane_tile, hw_pad


@functools.partial(jax.jit, static_argnames=("compute_dtype",))
def mixed_edge_forward(x_nchw, weights, biases, *, compute_dtype=jnp.bfloat16):
    """x_nchw:  (N, C, H, W) float32
    weights:   (K, C, C)  PyTorch Conv2d(C, C, 1) weights, squeezed (C_out, C_in)
    biases:    (K, C)
    returns:   (N, C, H, W) = x + sum_k conv1x1_k(x)   (same dtype as x)
    """
    N, C, H, W = x_nchw.shape
    HW = H * W
    out_dtype = x_nchw.dtype
    dtype_bytes = jnp.dtype(compute_dtype).itemsize

    nb, lane_tile, hw_pad = _pick_tiling(N, C, HW, dtype_bytes)

    # Pure reshape -- no NCHW<->NHWC transposes, channels stay on sublanes.
    x = x_nchw.reshape(N, C, HW)
    if hw_pad != HW:
        x = jnp.pad(x, ((0, 0), (0, 0), (0, hw_pad - HW)))
    x = x.astype(compute_dtype)

    # Exact fold of the un-gated candidate sum (identity + K 1x1 convs).
    # TODO(synk): a gated MixedEdge (softmax / binary-gate ProxylessNAS path)
    #             must fold g_k*W_k, g_k*b_k and g_identity*I instead.
    w_eff = (jnp.eye(C, dtype=jnp.float32)
             + jnp.sum(weights.astype(jnp.float32), axis=0)).astype(compute_dtype)
    b_eff = jnp.sum(biases.astype(jnp.float32), axis=0).reshape(C, 1)  # stays f32

    grid = (N // nb, hw_pad // lane_tile)

    out = pl.pallas_call(
        mixed_edge_kernel,
        out_shape=jax.ShapeDtypeStruct((N, C, hw_pad), out_dtype),
        grid_spec=pltpu.PrefetchScalarGridSpec(
            num_scalar_prefetch=0,
            grid=grid,
            in_specs=[
                pl.BlockSpec((nb, C, lane_tile), lambda bi, li: (bi, 0, li)),  # x
                pl.BlockSpec((C, C), lambda bi, li: (0, 0)),                   # W_eff
                pl.BlockSpec((C, 1), lambda bi, li: (0, 0)),                   # b_eff
            ],
            out_specs=pl.BlockSpec((nb, C, lane_tile), lambda bi, li: (bi, 0, li)),
        ),
        compiler_params=pltpu.CompilerParams(
            dimension_semantics=("parallel", "parallel"),
            vmem_limit_bytes=VMEM_LIMIT_BYTES,
        ),
    )(x, w_eff, b_eff)

    if hw_pad != HW:
        out = out[:, :, :HW]
    return out.reshape(N, C, H, W)


def reference_forward(x_nchw, weights, biases):
    """Plain-JAX reference: identity + per-candidate 1x1 convs (no fold, f32)."""
    N, C, H, W = x_nchw.shape
    x = x_nchw.reshape(N, C, H * W)
    out = x
    for k in range(weights.shape[0]):
        out = out + (jnp.einsum("oc,ncl->nol", weights[k], x)
                     + biases[k][None, :, None])
    return out.reshape(N, C, H, W)


if __name__ == "__main__":
    key = jax.random.PRNGKey(0)
    k_x, k_w, k_b = jax.random.split(key, 3)

    N, C, H, W = 2, 8, 16, 16       # H*W = 256 lanes per batch row
    K_CONV = 3                      # conv candidates (plus the identity candidate)

    x = jax.random.normal(k_x, (N, C, H, W), dtype=jnp.float32)
    # PyTorch Conv2d(C, C, 1) weight is (C_out, C_in, 1, 1); stored squeezed.
    weights = jax.random.normal(k_w, (K_CONV, C, C), dtype=jnp.float32) * 0.1
    biases = jax.random.normal(k_b, (K_CONV, C), dtype=jnp.float32) * 0.01

    ref = reference_forward(x, weights, biases)

    # Fast path: bf16 storage for x / W_eff, f32 MXU accumulation.
    out_bf16 = jax.block_until_ready(mixed_edge_forward(x, weights, biases))
    np.testing.assert_allclose(np.asarray(out_bf16), np.asarray(ref),
                               rtol=5e-2, atol=5e-2)

    # Exact path: full f32 storage, matches the module bit-for-bit up to fp assoc.
    out_f32 = jax.block_until_ready(
        mixed_edge_forward(x, weights, biases, compute_dtype=jnp.float32))
    np.testing.assert_allclose(np.asarray(out_f32), np.asarray(ref),
                               rtol=1e-5, atol=1e-5)

    print("KERNEL_OK")
</pallas_src>

<mosaic_0001>
module attributes {stable_mosaic.version = 11 : i64} {
  func.func @mixed_edge_kernel(%arg0: i32, %arg1: i32, %arg2: memref<1x8x256xbf16, #tpu.memory_space<vmem>>, %arg3: memref<8x8xbf16, #tpu.memory_space<vmem>>, %arg4: memref<8x1xf32, #tpu.memory_space<vmem>>, %arg5: memref<1x8x256xf32, #tpu.memory_space<vmem>>) attributes {dimension_semantics = [#tpu.dimension_semantics<parallel>, #tpu.dimension_semantics<parallel>], iteration_bounds = array<i64: 2, 1>, scalar_prefetch = 0 : i64, scratch_operands = 0 : i64, tpu.core_type = #tpu.core_type<tc>, window_params = [{transform_indices = @transform_0, window_bounds = array<i64: 1, 8, 256>}, {pipeline_mode = #tpu.pipeline_mode<synchronous>, transform_indices = @transform_1, window_bounds = array<i64: 8, 8>}, {pipeline_mode = #tpu.pipeline_mode<synchronous>, transform_indices = @transform_2, window_bounds = array<i64: 8, 1>}, {transform_indices = @transform_3, window_bounds = array<i64: 1, 8, 256>}]} {
    %c0 = arith.constant 0 : index
    %c0_0 = arith.constant 0 : index
    %0 = vector.load %arg3[%c0, %c0_0] : memref<8x8xbf16, #tpu.memory_space<vmem>>, vector<8x8xbf16>
    %c0_1 = arith.constant 0 : index
    %c0_2 = arith.constant 0 : index
    %1 = vector.load %arg4[%c0_1, %c0_2] : memref<8x1xf32, #tpu.memory_space<vmem>>, vector<8x1xf32>
    %c0_3 = arith.constant 0 : index
    %c0_4 = arith.constant 0 : index
    %c0_5 = arith.constant 0 : index
    %2 = vector.load %arg2[%c0_3, %c0_4, %c0_5] : memref<1x8x256xbf16, #tpu.memory_space<vmem>>, vector<1x8x256xbf16>
    %3 = vector.shape_cast %2 : vector<1x8x256xbf16> to vector<8x256xbf16>
    %cst = arith.constant dense<0.000000e+00> : vector<8x256xf32>
    %4 = tpu.matmul %0, %3, %cst {dimension_numbers = #tpu.dot_dimension_numbers<[1], [0], [0], [1], [0, 0, 1, 1], [], []>} : vector<8x8xbf16>, vector<8x256xbf16>, vector<8x256xf32> -> vector<8x256xf32>
    %5 = vector.broadcast %1 : vector<8x1xf32> to vector<8x256xf32>
    %6 = arith.addf %4, %5 : vector<8x256xf32>
    %c0_6 = arith.constant 0 : index
    %c0_7 = arith.constant 0 : index
    %c0_8 = arith.constant 0 : index
    %7 = vector.load %arg5[%c0_6, %c0_7, %c0_8] : memref<1x8x256xf32, #tpu.memory_space<vmem>>, vector<1x8x256xf32>
    %8 = vector.shape_cast %7 : vector<1x8x256xf32> to vector<8x256xf32>
    %9 = vector.shape_cast %6 : vector<8x256xf32> to vector<1x8x256xf32>
    tpu.vector_store %arg5[%c0_6, %c0_7, %c0_8], %9 {strides = array<i32>} : memref<1x8x256xf32, #tpu.memory_space<vmem>>, vector<1x8x256xf32>,
    return
  }
  func.func @transform_0(%arg0: i32, %arg1: i32) -> (i32, i32, i32) {
    %c0_i32 = arith.constant 0 : i32
    %c0_i32_0 = arith.constant 0 : i32
    return %arg0, %c0_i32, %arg1 : i32, i32, i32
  }
  func.func @transform_1(%arg0: i32, %arg1: i32) -> (i32, i32) {
    %c0_i32 = arith.constant 0 : i32
    %c0_i32_0 = arith.constant 0 : i32
    %c0_i32_1 = arith.constant 0 : i32
    return %c0_i32, %c0_i32_0 : i32, i32
  }
  func.func @transform_2(%arg0: i32, %arg1: i32) -> (i32, i32) {
    %c0_i32 = arith.constant 0 : i32
    %c0_i32_0 = arith.constant 0 : i32
    %c0_i32_1 = arith.constant 0 : i32
    return %c0_i32, %c0_i32_0 : i32, i32
  }
  func.func @transform_3(%arg0: i32, %arg1: i32) -> (i32, i32, i32) {
    %c0_i32 = arith.constant 0 : i32
    %c0_i32_0 = arith.constant 0 : i32
    return %arg0, %c0_i32, %arg1 : i32, i32, i32
  }
}

</mosaic_0001>

<bundles_post_ra>
// kernel: mixed_edge_forward.1
= control target key start
LH: loop header
LB: loop body
LE: loop exit
PB: predicated region body
PF: predicated region fallthrough
CT: control target
= control target key end

     0   :  { %s455_s12 = smov 0   ;;  %s457_s13 = smov 0   ;;  %s494_s0 = inlined_call_operand.vmem [shape: bf16[2,8,256], index: 0, kind: input, shape index: {}]   ;;  %s495_s1 = inlined_call_operand.vmem [shape: bf16[8,8], index: 1, kind: input, shape index: {}]   ;;  %s496_s2 = inlined_call_operand.vmem [shape: f32[8,1], index: 2, kind: input, shape index: {}]   ;;  %s497_s3 = inlined_call_operand.vmem [shape: f32[2,8,256], index: 3, kind: output, shape index: {}]  }
   0x1   :  { %s459_s14 = smov 0  }
   0x2 LB: > { %s25_s15 = sadd.s32 1, %s428_s13  ;;  %p369_p0 = scmp.ge.s32.totalorder %s432_s14, 1  ;;  %s432_s14 = sphi %s459_s14, %s13_s14   ;;  %s428_s13 = sphi %s457_s13, %s499_s13   ;;  %s424_s12 = sphi %s455_s12, %s498_s12  }
   0x3   : > { %p27_p1 = scmp.ge.s32.totalorder %s25_s15, 2  ;;  %p158_p2 = scmp.lt.s32.totalorder %s432_s14, 3 }
   0x5   : > { %s501_s15 = smov (%p27_p1, %s25_s15), 0  ;;  %p159_p3 = pnand %p369_p0, %p158_p2 }
   0x6   : > { %p191_p4 = scmp.lt.s32.totalorder (!%p159_p3), %s424_s12, 1  ;;  %v434_v0 = vmov (!%p159_p3), 0   ;;  %v212_v1 = vld [vmem:[%s496_s2] sm:$0xff] (!%p159_p3)  ;;  %vm228_vm0 = vcmask (!%p159_p3), 1043456   ;;  %vm224_vm1 = vcmask (!%p159_p3), 64512  }
   0x7   : > { %162 = sbr.rel (%p159_p3) target bundleno = 240 (0xf0), region = 32  ;;  %267 = vmatprep.mubr.bf16.mxu0 (!%p159_p3), %v434_v0  ;;  %407 = vset.pattern.permute.xlu0 (!%p159_p3), %v434_v0  ;;  %v211_v6 = vld [vmem:[%s495_s1] sm:$0xf] (!%p159_p3) }
   0x8   : > { %216 = vperm.xlu0 (!%p159_p3), %407, %v212_v1  }
   0xe   : > { %s503_s12 = smov (!%p191_p4, %s424_s12), 1 }
   0xf   : > { %s380_s18 = sshll.u32 %s503_s12, 3  ;;  %s381_s24 = sshll.u32 %s503_s12, 4 }
  0x10   : > { %s198_s21 = scalar_lea.vmem %s494_s0, %s380_s18  ;;  %s208_s27 = scalar_lea.vmem %s497_s3, %s381_s24 }
  0x11   : > { %v213_v2 = vld [vmem:[%s198_s21] sm:$0xff] }
  0x12   : > { %v375_v3 = vcombine.high %v213_v2, %v213_v2  ;;  %v374_v4 = vcombine.low %v213_v2, %v213_v2 }
  0x14   : > { %376 = vmatprep.subr.msk.bf16.mxu0 %vm228_vm0, %v375_v3  ;;  %v230_v5 = vsel %vm228_vm0, %v374_v4, 0 }
  0x15   : > { %236 = vmatpush1.bf16.msra.mxu0 %v230_v5 }
  0x18   : > { %377 = vmatmul.mubr.msk.bf16.vlgmr.msra.gmra.mrb[0].mxu0 %vm224_vm1, %v211_v6 }
  0x87   : > { %v217_v7 = vpop.permute.xlu0 %216 }
  0xeb   : > { %v269_v8 = vpop.f32.mrb[0].mxu0 }
  0xec   : > { %v270_v9 = vadd.f32 %v269_v8, %v217_v7  ;;  %v271_v10 = vpop.f32.mrb[1].mxu0 }
  0xed   : > { %v272_v11 = vadd.f32 %v271_v10, %v217_v7  ;;  %v273_v12 = vpop.f32.mrb[2].mxu0 }
  0xee   : > { %276 = vst [vmem:[%s208_s27] sm:$0xff] %v270_v9  ;;  %v274_v13 = vpop.f32.mrb[3].mxu0 }
  0xef   : > { %277 = vst [vmem:[%s208_s27 + $0x8] sm:$0xff] %v272_v11 }
  0xf0 PF: > { %s13_s14 = sadd.s32 1, %s432_s14   ;;  %s498_s12 = smov %s428_s13 }
  0xf1   : > { %p10_p5 = scmp.ge.s32.totalorder %s13_s14, 4   ;;  %s499_s13 = smov %s501_s15 }
  0xf3   :  { %12 = sbr.rel (!%p10_p5) target bundleno = 2 (0x2), region = 62 }

</bundles_post_ra>
